<compile_context>
chip_gen: v6e
topology: v6e:2x2x1
jax: 0.10.0
libtpu: 0.0.40
codegen_flags: <defaults>
</compile_context>

<pallas_src>
import jax
import jax.numpy as jnp
from jax.experimental import pallas as pl
from jax.experimental.pallas import tpu as pltpu


# ---------------------------------------------------------------------------
# Fused Pallas kernel: batched (im2col patches) -> stem+BN+proj matmul -> relu
#                      -> avg-pool (as MXU matmul) -> fc matmul + bias
# One grid step per batch tile of TB images.
# ---------------------------------------------------------------------------

def _nasnet_fused_kernel(p_ref, w1_ref, b1_ref, pool_ref, w2_ref, b2_ref, o_ref):
    # p_ref   : (1, TB*S, K) bf16 im2col patches for TB images (rows grouped per image)
    # w1_ref  : (K, C)       bf16 folded (conv*BN) @ proj weights, C = fc_in
    # b1_ref  : (1, C)       f32  folded bias
    # pool_ref: (TB, TB*S)   bf16 block-diagonal ones matrix (per-image row sum on MXU)
    # w2_ref  : (C, NCp)     bf16 fc weight with 1/S folded in, class dim padded to 128
    # b2_ref  : (1, NCp)     f32  fc bias (zero padded)
    # o_ref   : (1, TB, NCp) f32  logits for this batch tile
    p = p_ref[0]  # (TB*S, K)

    # stem conv + BN + placeholder 1x1 projection (all linear, constant-folded)
    feat = (
        jnp.dot(p, w1_ref[...], preferred_element_type=jnp.float32) + b1_ref[...]
    )  # (TB*S, C) f32, stays in VMEM

    # classifier: relu (f32) -> AvgPool2d(11) == per-image sum over S rows (1/S is
    # folded into w2); the group-sum is an MXU matmul against the ones-block matrix.
    x = jnp.maximum(feat, 0.0).astype(jnp.bfloat16)
    pooled = jnp.dot(pool_ref[...], x, preferred_element_type=jnp.float32)  # (TB, C)

    # fc: (TB, C) @ (C, NCp) + bias, stored as one lane-dense (TB, 128) slab
    o_ref[0] = (
        jnp.dot(pooled.astype(jnp.bfloat16), w2_ref[...],
                preferred_element_type=jnp.float32)
        + b2_ref[...]
    )


def nasnet_fused(patches, w1, b1, w2, b2, *, batch_tile=None):
    N, S, K = patches.shape
    C = w1.shape[1]
    NC = w2.shape[1]

    # Lane-dense output: pad class dim to a full multiple of 128 lanes (zeros),
    # slice back at the end.  Padding is free layout plumbing in the wrapper.
    NCp = ((NC + 127) // 128) * 128
    w2p = jnp.pad(w2, ((0, 0), (0, NCp - NC))).astype(jnp.bfloat16)
    b2p = jnp.pad(b2, ((0, 0), (0, NCp - NC)))

    # Batch tile: amortizes the ~0.35us per-grid-step overhead and raises matmul M.
    # Default sized conservatively for v7x's 64 MiB VMEM; raise on v5e/v6e (128 MiB).
    if batch_tile is None:
        batch_tile = min(N, 64)
    TB = batch_tile
    num_tiles = pl.cdiv(N, TB)
    N_pad = num_tiles * TB
    if N_pad != N:
        patches = jnp.pad(patches, ((0, N_pad - N), (0, 0), (0, 0)))

    # bf16 dot operands (f32 accumulation happens inside the kernel).
    p_in = patches.reshape(num_tiles, TB * S, K).astype(jnp.bfloat16)
    w1c = w1.astype(jnp.bfloat16)

    # Block-diagonal ones matrix: pooled = pool_mat @ relu(feat) sums the S rows of
    # each image on the MXU (exactly representable in bf16).
    pool_mat = (
        jnp.arange(TB)[:, None] == (jnp.arange(TB * S)[None, :] // S)
    ).astype(jnp.bfloat16)

    out = pl.pallas_call(
        _nasnet_fused_kernel,
        out_shape=jax.ShapeDtypeStruct((num_tiles, TB, NCp), jnp.float32),
        grid=(num_tiles,),
        in_specs=[
            pl.BlockSpec((1, TB * S, K), lambda t: (t, 0, 0)),
            pl.BlockSpec((K, C), lambda t: (0, 0)),
            pl.BlockSpec((1, C), lambda t: (0, 0)),
            pl.BlockSpec((TB, TB * S), lambda t: (0, 0)),
            pl.BlockSpec((C, NCp), lambda t: (0, 0)),
            pl.BlockSpec((1, NCp), lambda t: (0, 0)),
        ],
        out_specs=pl.BlockSpec((1, TB, NCp), lambda t: (t, 0, 0)),
        compiler_params=pltpu.CompilerParams(
            dimension_semantics=("parallel",),
        ),
    )(p_in, w1c, b1, pool_mat, w2p, b2p)

    return out.reshape(N_pad, NCp)[:N, :NC]


# ---------------------------------------------------------------------------
# Glue: im2col (plain JAX), parameter construction with constant folding, forward
# ---------------------------------------------------------------------------

def im2col(x_nhwc, kh, kw, stride):
    """Extract (kh, kw, Cin)-ordered patches. Returns (N, OH*OW, kh*kw*Cin)."""
    N, H, W, C = x_nhwc.shape
    OH = (H - kh) // stride + 1
    OW = (W - kw) // stride + 1
    cols = []
    for i in range(kh):
        for j in range(kw):
            cols.append(
                x_nhwc[:, i : i + stride * OH : stride, j : j + stride * OW : stride, :]
            )
    p = jnp.stack(cols, axis=3)  # (N, OH, OW, kh*kw, C)
    return p.reshape(N, OH * OW, kh * kw * C), (N, OH, OW)


def make_params(key, stem_filters, filters, scaling, num_classes, pool_size=11):
    ks = jax.random.split(key, 10)
    fc_in = int(6 * filters * scaling ** 2)
    hp = jax.lax.Precision.HIGHEST

    # stem conv: PyTorch layout (F, Cin=3, 3, 3) -> matmul layout (kh, kw, cin, F)
    w_conv_pt = 0.1 * jax.random.normal(ks[0], (stem_filters, 3, 3, 3), jnp.float32)
    w_conv = jnp.transpose(w_conv_pt, (2, 3, 1, 0)).reshape(3 * 3 * 3, stem_filters)
    b_conv = 0.1 * jax.random.normal(ks[1], (stem_filters,), jnp.float32)

    # BatchNorm2d (eval): y = gamma*(x - mean)/sqrt(var+eps) + beta
    gamma = 1.0 + 0.1 * jax.random.normal(ks[2], (stem_filters,), jnp.float32)
    beta = 0.1 * jax.random.normal(ks[3], (stem_filters,), jnp.float32)
    r_mean = 0.1 * jax.random.normal(ks[4], (stem_filters,), jnp.float32)
    r_var = 0.5 + jnp.abs(jax.random.normal(ks[5], (stem_filters,), jnp.float32))
    eps = 1e-3
    bn_scale = gamma / jnp.sqrt(r_var + eps)
    stem_bias = (b_conv - r_mean) * bn_scale + beta  # (F,)

    # placeholder 1x1 projection standing in for the undefined NASNet cell stack
    w_proj = 0.1 * jax.random.normal(ks[6], (stem_filters, fc_in), jnp.float32)
    b_proj = 0.1 * jax.random.normal(ks[7], (1, fc_in), jnp.float32)

    # fc: PyTorch weight is (num_classes, fc_in); we store the transpose.
    w_fc = 0.1 * jax.random.normal(ks[8], (fc_in, num_classes), jnp.float32)
    b_fc = 0.1 * jax.random.normal(ks[9], (1, num_classes), jnp.float32)

    # ---- constant folding (linear stages back-to-back, no nonlinearity) ----
    # Done at Precision.HIGHEST so folding introduces no extra bf16-pass error.
    # stem+BN:  y = p @ (w_conv * bn_scale) + stem_bias
    # proj   :  f = y @ w_proj + b_proj
    w1 = jnp.matmul(w_conv * bn_scale[None, :], w_proj, precision=hp)   # (27, fc_in)
    b1 = jnp.matmul(stem_bias[None, :], w_proj, precision=hp) + b_proj  # (1, fc_in)

    # classifier: mean over S == (sum over S) * (1/S); fold 1/S into the fc weight.
    S = pool_size * pool_size
    w2 = w_fc / jnp.float32(S)                            # (fc_in, num_classes)
    b2 = b_fc                                             # (1, num_classes)

    # keep the unfolded pieces around for the reference checks in __main__
    return dict(
        w1=w1, b1=b1, w2=w2, b2=b2, fc_in=fc_in,
        _w_conv=w_conv, _bn_scale=bn_scale, _stem_bias=stem_bias,
        _w_proj=w_proj, _b_proj=b_proj, _w_fc=w_fc, _b_fc=b_fc,
    )


def nasnet_forward(x_nchw, params, *, batch_tile=None):
    # NCHW (PyTorch) -> NHWC
    x = jnp.transpose(x_nchw, (0, 2, 3, 1)).astype(jnp.float32)

    # stem Conv2d(3, stem_filters, 3, stride=2, no pad) as im2col patches
    patches, (N, OH, OW) = im2col(x, 3, 3, 2)  # (N, 11*11, 27)

    # single fused kernel: stem+BN+proj matmul, relu, avg-pool, fc
    return nasnet_fused(
        patches, params["w1"], params["b1"], params["w2"], params["b2"],
        batch_tile=batch_tile,
    )


def _reference_forward(x_nchw, params):
    """Unfused / unfolded pure-f32 reference (semantic sanity check)."""
    x = jnp.transpose(x_nchw, (0, 2, 3, 1)).astype(jnp.float32)
    patches, (N, OH, OW) = im2col(x, 3, 3, 2)
    hp = jax.lax.Precision.HIGHEST
    stem = (
        jnp.einsum("nsk,kf->nsf", patches, params["_w_conv"], precision=hp)
        * params["_bn_scale"][None, None, :]
        + params["_stem_bias"][None, None, :]
    )
    feat = (
        jnp.einsum("nsf,fc->nsc", stem, params["_w_proj"], precision=hp)
        + params["_b_proj"][None, :, :]
    )
    pooled = jnp.mean(jnp.maximum(feat, 0.0), axis=1)  # relu -> AvgPool2d(11)
    return jnp.dot(pooled, params["_w_fc"], precision=hp) + params["_b_fc"]


def _matched_reference(patches, params):
    """Pure-JAX reference with the SAME folded bf16 operands / op order as the kernel
    (isolates fusion / layout correctness from the bf16 dtype choice)."""
    p = patches.astype(jnp.bfloat16)
    w1 = params["w1"].astype(jnp.bfloat16)
    w2 = params["w2"].astype(jnp.bfloat16)
    feat = (
        jnp.einsum("nsk,kc->nsc", p, w1, preferred_element_type=jnp.float32)
        + params["b1"][None]
    )
    x = jnp.maximum(feat, 0.0).astype(jnp.bfloat16)
    pooled = jnp.sum(x.astype(jnp.float32), axis=1)  # (N, C) f32 accumulation
    return (
        jnp.dot(pooled.astype(jnp.bfloat16), w2, preferred_element_type=jnp.float32)
        + params["b2"]
    )


if __name__ == "__main__":
    # config: stem_filters=8, filters=8, scaling=2, normals=2, num_classes=10, use_aux=False
    stem_filters, filters, scaling, num_classes = 8, 8, 2, 10

    key = jax.random.PRNGKey(0)
    k_in, k_par = jax.random.split(key)

    # input chosen so the stem (3x3, stride 2, no pad) yields the 11x11 map that
    # NASNet's AvgPool2d(11) expects:  (23 - 3) // 2 + 1 == 11
    x = jax.random.normal(k_in, (2, 3, 23, 23), jnp.float32)  # NCHW like PyTorch

    params = make_params(k_par, stem_filters, filters, scaling, num_classes)

    out = nasnet_forward(x, params)
    out = jax.block_until_ready(out)
    assert out.shape == (2, num_classes)

    # 1) tight check vs. a pure-JAX path using identical folded bf16 operands
    patches, _ = im2col(jnp.transpose(x, (0, 2, 3, 1)).astype(jnp.float32), 3, 3, 2)
    matched = jax.block_until_ready(_matched_reference(patches, params))
    assert jnp.allclose(out, matched, atol=2e-3, rtol=2e-3), (
        float(jnp.max(jnp.abs(out - matched)))
    )

    # 2) semantic sanity vs. the unfolded f32 HIGHEST reference (covers bf16 rounding)
    ref = jax.block_until_ready(_reference_forward(x, params))
    assert jnp.allclose(out, ref, atol=1e-2, rtol=1e-2), (
        float(jnp.max(jnp.abs(out - ref)))
    )

    print("KERNEL_OK")
</pallas_src>

<mosaic_0001>
module attributes {stable_mosaic.version = 11 : i64} {
  func.func @_nasnet_fused_kernel(%arg0: i32, %arg1: memref<1x242x27xbf16, #tpu.memory_space<vmem>>, %arg2: memref<27x192xbf16, #tpu.memory_space<vmem>>, %arg3: memref<1x192xf32, #tpu.memory_space<vmem>>, %arg4: memref<2x242xbf16, #tpu.memory_space<vmem>>, %arg5: memref<192x128xbf16, #tpu.memory_space<vmem>>, %arg6: memref<1x128xf32, #tpu.memory_space<vmem>>, %arg7: memref<1x2x128xf32, #tpu.memory_space<vmem>>) attributes {dimension_semantics = [#tpu.dimension_semantics<parallel>], iteration_bounds = array<i64: 1>, scalar_prefetch = 0 : i64, scratch_operands = 0 : i64, tpu.core_type = #tpu.core_type<tc>, window_params = [{transform_indices = @transform_0, window_bounds = array<i64: 1, 242, 27>}, {pipeline_mode = #tpu.pipeline_mode<synchronous>, transform_indices = @transform_1, window_bounds = array<i64: 27, 192>}, {pipeline_mode = #tpu.pipeline_mode<synchronous>, transform_indices = @transform_2, window_bounds = array<i64: 1, 192>}, {pipeline_mode = #tpu.pipeline_mode<synchronous>, transform_indices = @transform_3, window_bounds = array<i64: 2, 242>}, {pipeline_mode = #tpu.pipeline_mode<synchronous>, transform_indices = @transform_4, window_bounds = array<i64: 192, 128>}, {pipeline_mode = #tpu.pipeline_mode<synchronous>, transform_indices = @transform_5, window_bounds = array<i64: 1, 128>}, {transform_indices = @transform_6, window_bounds = array<i64: 1, 2, 128>}]} {
    %c0 = arith.constant 0 : index
    %c0_0 = arith.constant 0 : index
    %c0_1 = arith.constant 0 : index
    %0 = vector.load %arg1[%c0, %c0_0, %c0_1] : memref<1x242x27xbf16, #tpu.memory_space<vmem>>, vector<1x242x27xbf16>
    %1 = vector.shape_cast %0 : vector<1x242x27xbf16> to vector<242x27xbf16>
    %c0_2 = arith.constant 0 : index
    %c0_3 = arith.constant 0 : index
    %2 = vector.load %arg2[%c0_2, %c0_3] : memref<27x192xbf16, #tpu.memory_space<vmem>>, vector<27x192xbf16>
    %cst = arith.constant dense<0.000000e+00> : vector<242x192xf32>
    %3 = tpu.matmul %1, %2, %cst {dimension_numbers = #tpu.dot_dimension_numbers<[1], [0], [0], [1], [0, 0, 1, 1], [], []>} : vector<242x27xbf16>, vector<27x192xbf16>, vector<242x192xf32> -> vector<242x192xf32>
    %c0_4 = arith.constant 0 : index
    %c0_5 = arith.constant 0 : index
    %4 = vector.load %arg3[%c0_4, %c0_5] : memref<1x192xf32, #tpu.memory_space<vmem>>, vector<1x192xf32>
    %5 = vector.broadcast %4 : vector<1x192xf32> to vector<242x192xf32>
    %6 = arith.addf %3, %5 : vector<242x192xf32>
    %cst_6 = arith.constant 0.000000e+00 : f32
    %7 = vector.broadcast %cst_6 : f32 to vector<242x192xf32>
    %8 = arith.maximumf %6, %7 : vector<242x192xf32>
    %9 = arith.truncf %8 : vector<242x192xf32> to vector<242x192xbf16>
    %c0_7 = arith.constant 0 : index
    %c0_8 = arith.constant 0 : index
    %10 = vector.load %arg4[%c0_7, %c0_8] : memref<2x242xbf16, #tpu.memory_space<vmem>>, vector<2x242xbf16>
    %cst_9 = arith.constant dense<0.000000e+00> : vector<2x192xf32>
    %11 = tpu.matmul %10, %9, %cst_9 {dimension_numbers = #tpu.dot_dimension_numbers<[1], [0], [0], [1], [0, 0, 1, 1], [], []>} : vector<2x242xbf16>, vector<242x192xbf16>, vector<2x192xf32> -> vector<2x192xf32>
    %12 = arith.truncf %11 : vector<2x192xf32> to vector<2x192xbf16>
    %c0_10 = arith.constant 0 : index
    %c0_11 = arith.constant 0 : index
    %13 = vector.load %arg5[%c0_10, %c0_11] : memref<192x128xbf16, #tpu.memory_space<vmem>>, vector<192x128xbf16>
    %cst_12 = arith.constant dense<0.000000e+00> : vector<2x128xf32>
    %14 = tpu.matmul %12, %13, %cst_12 {dimension_numbers = #tpu.dot_dimension_numbers<[1], [0], [0], [1], [0, 0, 1, 1], [], []>} : vector<2x192xbf16>, vector<192x128xbf16>, vector<2x128xf32> -> vector<2x128xf32>
    %c0_13 = arith.constant 0 : index
    %c0_14 = arith.constant 0 : index
    %15 = vector.load %arg6[%c0_13, %c0_14] : memref<1x128xf32, #tpu.memory_space<vmem>>, vector<1x128xf32>
    %16 = vector.broadcast %15 : vector<1x128xf32> to vector<2x128xf32>
    %17 = arith.addf %14, %16 : vector<2x128xf32>
    %c0_15 = arith.constant 0 : index
    %c0_16 = arith.constant 0 : index
    %c0_17 = arith.constant 0 : index
    %18 = vector.load %arg7[%c0_15, %c0_16, %c0_17] : memref<1x2x128xf32, #tpu.memory_space<vmem>>, vector<1x2x128xf32>
    %19 = vector.shape_cast %18 : vector<1x2x128xf32> to vector<2x128xf32>
    %20 = vector.shape_cast %17 : vector<2x128xf32> to vector<1x2x128xf32>
    tpu.vector_store %arg7[%c0_15, %c0_16, %c0_17], %20 {strides = array<i32>} : memref<1x2x128xf32, #tpu.memory_space<vmem>>, vector<1x2x128xf32>,
    return
  }
  func.func @transform_0(%arg0: i32) -> (i32, i32, i32) {
    %c0_i32 = arith.constant 0 : i32
    %c0_i32_0 = arith.constant 0 : i32
    %c0_i32_1 = arith.constant 0 : i32
    return %arg0, %c0_i32, %c0_i32_0 : i32, i32, i32
  }
  func.func @transform_1(%arg0: i32) -> (i32, i32) {
    %c0_i32 = arith.constant 0 : i32
    %c0_i32_0 = arith.constant 0 : i32
    %c0_i32_1 = arith.constant 0 : i32
    return %c0_i32, %c0_i32_0 : i32, i32
  }
  func.func @transform_2(%arg0: i32) -> (i32, i32) {
    %c0_i32 = arith.constant 0 : i32
    %c0_i32_0 = arith.constant 0 : i32
    %c0_i32_1 = arith.constant 0 : i32
    return %c0_i32, %c0_i32_0 : i32, i32
  }
  func.func @transform_3(%arg0: i32) -> (i32, i32) {
    %c0_i32 = arith.constant 0 : i32
    %c0_i32_0 = arith.constant 0 : i32
    %c0_i32_1 = arith.constant 0 : i32
    return %c0_i32, %c0_i32_0 : i32, i32
  }
  func.func @transform_4(%arg0: i32) -> (i32, i32) {
    %c0_i32 = arith.constant 0 : i32
    %c0_i32_0 = arith.constant 0 : i32
    %c0_i32_1 = arith.constant 0 : i32
    return %c0_i32, %c0_i32_0 : i32, i32
  }
  func.func @transform_5(%arg0: i32) -> (i32, i32) {
    %c0_i32 = arith.constant 0 : i32
    %c0_i32_0 = arith.constant 0 : i32
    %c0_i32_1 = arith.constant 0 : i32
    return %c0_i32, %c0_i32_0 : i32, i32
  }
  func.func @transform_6(%arg0: i32) -> (i32, i32, i32) {
    %c0_i32 = arith.constant 0 : i32
    %c0_i32_0 = arith.constant 0 : i32
    %c0_i32_1 = arith.constant 0 : i32
    return %arg0, %c0_i32, %c0_i32_0 : i32, i32, i32
  }
}

</mosaic_0001>

<bundles_post_ra>
// kernel: tpu_custom_call.1
= control target key start
LH: loop header
LB: loop body
LE: loop exit
PB: predicated region body
PF: predicated region fallthrough
CT: control target
= control target key end

     0   :  { %vm217_vm0 = vcmask 1044480   ;;  %vm218_vm1 = vcmask 1045504   ;;  %v866_v2 = vmov 65535   ;;  %v867_v5 = vmov 0   ;;  %s1198_s0 = inlined_call_operand.vmem [shape: bf16[1,242,27], index: 0, kind: input, shape index: {}]   ;;  %s1199_s1 = inlined_call_operand.vmem [shape: bf16[27,192], index: 1, kind: input, shape index: {}]   ;;  %s1200_s2 = inlined_call_operand.vmem [shape: f32[1,192], index: 2, kind: input, shape index: {}]   ;;  %s1201_s3 = inlined_call_operand.vmem [shape: bf16[2,242], index: 3, kind: input, shape index: {}]   ;;  %s1202_s4 = inlined_call_operand.vmem [shape: bf16[192,128], index: 4, kind: input, shape index: {}]   ;;  %s1203_s5 = inlined_call_operand.vmem [shape: f32[1,128], index: 5, kind: input, shape index: {}]   ;;  %s1204_s6 = inlined_call_operand.hbm [shape: f32[1,2,128], index: 6, kind: output, shape index: {}]  }
   0x1   :  { %v810_v0 = vld [vmem:[%s1199_s1 + $0x14] ss:$8 sps:$4 sm:$0x3f]   ;;  %v812_v1 = vld [vmem:[%s1199_s1 + $0x10] ss:$8 sps:$4 sm:$0x3f]   ;;  %259 = vmatprep.mubr.bf16.mxu0 %v867_v5 }
   0x2   :  { %v219_v3 = vsel %vm217_vm0, 4294967295, %v866_v2  ;;  %v813_v8 = vld [vmem:[%s1199_s1 + $0x4] ss:$8 sps:$4 sm:$0xff]   ;;  %v815_v9 = vld [vmem:[%s1199_s1] ss:$8 sps:$4 sm:$0xff]   ;;  %vm168_vm2 = vcmask 220160  }
   0x3   :  { %v220_v4 = vsel %vm218_vm1, %v219_v3, 0  ;;  %v816_v10 = vld [vmem:[%s1198_s0] sm:$0xff]   ;;  %v817_v11 = vld [vmem:[%s1198_s0 + $0x8] sm:$0xff]   ;;  %v818_v12 = vld [vmem:[%s1198_s0 + $0x10] sm:$0xff]  }
   0x4   :  { %v225_v6 = vand.u32 %v810_v0, %v220_v4  ;;  %v222_v7 = vand.u32 %v812_v1, %v220_v4 }
   0x6   :  { %239 = vmatprep.subr.bf16.mxu0 %v225_v6 }
   0x7   :  { %240 = vmatpush1.bf16.msra.mxu0 %v222_v7 }
   0x8   :  { %241 = vmatprep.subr.bf16.mxu0 %v813_v8 }
   0xb   :  { %242 = vmatpush1.bf16.msra.mxu0 %v815_v9 }
   0xe   :  { %773 = vmatmul.mubr.msk.bf16.vlgmr.msra.gmra.mxu0 %vm168_vm2, %v816_v10 }
   0xf   :  { %269 = vmatprep.mubr.bf16.mxu0 %v867_v5 }
  0x16   :  { %774 = vmatmul.mubr.msk.bf16.gmra.mxu0 %vm168_vm2, %v817_v11 }
  0x17   :  { %279 = vmatprep.mubr.bf16.mxu0 %v867_v5 }
  0x18   :  { %11 = vsyncpa [#allocation3], 0  ;;  %v819_v13 = vld [vmem:[%s1198_s0 + $0x18] sm:$0xff]   ;;  %v820_v14 = vld [vmem:[%s1198_s0 + $0x20] sm:$0xff]   ;;  %v62_v26 = vlaneseq  ;;  %v868_v2 = vmov 1966171168  }
  0x19   :  { %v821_v15 = vld [vmem:[%s1198_s0 + $0x28] sm:$0xff]   ;;  %v822_v16 = vld [vmem:[%s1198_s0 + $0x30] sm:$0xff]   ;;  %v823_v17 = vld [vmem:[%s1198_s0 + $0x38] sm:$0xff]   ;;  %v523_v3 = vunpack.c.l.s4 %v868_v2  ;;  %vm537_vm3 = vcmask 932864   ;;  %vm541_vm4 = vcmask 1040384   ;;  %vm694_vm5 = vcmask 523264  }
  0x1a   :  { %v824_v18 = vld [vmem:[%s1198_s0 + $0x40] sm:$0xff]   ;;  %v825_v19 = vld [vmem:[%s1198_s0 + $0x48] sm:$0xff]   ;;  %v826_v20 = vld [vmem:[%s1198_s0 + $0x50] sm:$0xff]   ;;  %v63_v27 = vshrl.u32 %v62_v26, 7 }
  0x1b   :  { %v827_v21 = vld [vmem:[%s1198_s0 + $0x58] sm:$0xff]   ;;  %v828_v22 = vld [vmem:[%s1198_s0 + $0x60] sm:$0xff]   ;;  %v829_v23 = vld [vmem:[%s1198_s0 + $0x68] sm:$0xff]   ;;  %v524_v6 = vunpack.c.0.s8 %v523_v3 }
  0x1c   :  { %v830_v24 = vld [vmem:[%s1198_s0 + $0x70] sm:$0xff]   ;;  %v831_v25 = vld [vmem:[%s1198_s0 + $0x78] ss:$0 sps:$4 sm:$0x11]   ;;  %v64_v28 = vsub.s32 0, %v63_v27  ;;  %v68_v30 = vsub.s32 1, %v63_v27 }
  0x1d   :  { %v60_v29 = vld [vmem:[%s1200_s2] sm:$0x3]  ;;  %v1041_v10 = vsub.s32 %v524_v6, %v63_v27  ;;  %s869_s0 = smov [#allocation2]  }
  0x1e   :  { %775 = vmatmul.mubr.msk.bf16.gmra.mxu0 %vm168_vm2, %v818_v12  ;;  %v1000_v31 = vrot.slane %v60_v29, %v64_v28  ;;  %v1002_v33 = vrot.slane %v60_v29, %v68_v30  ;;  %v1035_v7 = vld.sshfl [vmem:[%s1201_s3] sm:$0x11 pattern:$0x75316420]  ;;  %s745_s2 = sshll.u32 %s869_s0, 4  ;;  %s746_s2 = int_to_ptr.vmem [resolvable:$true] %s745_s2 }
  0x1f   :  { %289 = vmatprep.mubr.bf16.mxu0 %v867_v5  ;;  %v521_v9 = vcombine.high %v1035_v7, %v1035_v7  ;;  %p849_p1 = scmp.lt.s32.totalorder %s746_s2, %s746_s2 }
  0x21   :  { %v535_v12 = vrot.slane %v521_v9, %v1041_v10 }
  0x23   :  { %791 = vmatprep.mubr.msk.bf16.mxu1 %vm537_vm3, %v535_v12 }
  0x26   :  { %776 = vmatmul.mubr.msk.bf16.gmra.mxu0 %vm168_vm2, %v819_v13  ;;  %v528_v13 = vrot.slane %v1035_v7, %v1041_v10  ;;  %v835_v7 = vld [vmem:[%s1202_s4 + $0x20] sm:$0xff]   ;;  %v836_v10 = vld [vmem:[%s1202_s4 + $0x18] sm:$0xff]  }
  0x27   :  { %299 = vmatprep.mubr.bf16.mxu0 %v867_v5 }
  0x2e   :  { %777 = vmatmul.mubr.msk.bf16.gmra.mxu0 %vm168_vm2, %v820_v14 }
  0x2f   :  { %309 = vmatprep.mubr.bf16.mxu0 %v867_v5 }
  0x36   :  { %778 = vmatmul.mubr.msk.bf16.gmra.mxu0 %vm168_vm2, %v821_v15 }
  0x37   :  { %319 = vmatprep.mubr.bf16.mxu0 %v867_v5 }
  0x3e   :  { %779 = vmatmul.mubr.msk.bf16.gmra.mxu0 %vm168_vm2, %v822_v16 }
  0x3f   :  { %329 = vmatprep.mubr.bf16.mxu0 %v867_v5 }
  0x46   :  { %780 = vmatmul.mubr.msk.bf16.gmra.mxu0 %vm168_vm2, %v823_v17 }
  0x47   :  { %339 = vmatprep.mubr.bf16.mxu0 %v867_v5 }
  0x4e   :  { %781 = vmatmul.mubr.msk.bf16.gmra.mxu0 %vm168_vm2, %v824_v18 }
  0x4f   :  { %349 = vmatprep.mubr.bf16.mxu0 %v867_v5 }
  0x56   :  { %782 = vmatmul.mubr.msk.bf16.gmra.mxu0 %vm168_vm2, %v825_v19 }
  0x57   :  { %359 = vmatprep.mubr.bf16.mxu0 %v867_v5 }
  0x5e   :  { %783 = vmatmul.mubr.msk.bf16.gmra.mxu0 %vm168_vm2, %v826_v20 }
  0x5f   :  { %369 = vmatprep.mubr.bf16.mxu0 %v867_v5 }
  0x66   :  { %784 = vmatmul.mubr.msk.bf16.gmra.mxu0 %vm168_vm2, %v827_v21 }
  0x67   :  { %379 = vmatprep.mubr.bf16.mxu0 %v867_v5 }
  0x6e   :  { %785 = vmatmul.mubr.msk.bf16.gmra.mxu0 %vm168_vm2, %v828_v22 }
  0x6f   :  { %389 = vmatprep.mubr.bf16.mxu0 %v867_v5 }
  0x76   :  { %786 = vmatmul.mubr.msk.bf16.gmra.mxu0 %vm168_vm2, %v829_v23 }
  0x77   :  { %399 = vmatprep.mubr.bf16.mxu0 %v867_v5 }
  0x7e   :  { %787 = vmatmul.mubr.msk.bf16.gmra.mxu0 %vm168_vm2, %v830_v24 }
  0x7f   :  { %409 = vmatprep.mubr.bf16.mxu0 %v867_v5 }
  0x86   :  { %788 = vmatmul.mubr.msk.bf16.gmra.mxu0 %vm168_vm2, %v831_v25 }
  0xce   :  { %v261_v32 = vpop.f32.mrf.mxu0 }
  0xcf   :  { %v262_v35 = vadd.f32 %v261_v32, %v1000_v31 }
  0xd0   :  { %v263_v34 = vpop.f32.mrf.mxu0 }
  0xd1   :  { %v264_v37 = vadd.f32 %v263_v34, %v1002_v33  ;;  %v418_v40 = vmax.f32 %v262_v35, 0.0 }
  0xd2   :  { %v265_v36 = vpop.f32.mrf.mxu0 }
  0xd3   :  { %v266_v38 = vadd.f32 %v265_v36, %v1000_v31  ;;  %v419_v44 = vmax.f32 %v264_v37, 0.0 }
  0xd4   :  { %v267_v39 = vpop.f32.mrf.mxu0 }
  0xd5   :  { %v420_v41 = vmax.f32 %v266_v38, 0.0  ;;  %v268_v42 = vadd.f32 %v267_v39, %v1002_v33 }
  0xd6   :  { %v271_v43 = vpop.f32.mrf.mxu0 }
  0xd7   :  { %v1008_v45 = vpack.c.bf16 %v420_v41, %v418_v40  ;;  %v421_v46 = vmax.f32 %v268_v42, 0.0  ;;  %v272_v49 = vadd.f32 %v271_v43, %v1000_v31 }
  0xd8   :  { %v273_v47 = vpop.f32.mrf.mxu0 }
  0xd9   :  { %v1010_v48 = vpack.c.bf16 %v421_v46, %v419_v44  ;;  %v274_v51 = vadd.f32 %v273_v47, %v1002_v33  ;;  %v422_v54 = vmax.f32 %v272_v49, 0.0 }
  0xda   :  { %v275_v50 = vpop.f32.mrf.mxu0 }
  0xdb   :  { %v276_v52 = vadd.f32 %v275_v50, %v1000_v31  ;;  %v423_v58 = vmax.f32 %v274_v51, 0.0 }
  0xdc   :  { %v277_v53 = vpop.f32.mrf.mxu0 }
  0xdd   :  { %v424_v55 = vmax.f32 %v276_v52, 0.0  ;;  %v278_v56 = vadd.f32 %v277_v53, %v1002_v33 }
  0xde   :  { %v1016_v57 = vpop.f32.mrf.mxu0 }
  0xdf   :  { %v1018_v59 = vpack.c.bf16 %v424_v55, %v422_v54  ;;  %v425_v60 = vmax.f32 %v278_v56, 0.0 }
  0xe0   :  { %v1020_v61 = vpop.f32.mrf.mxu0 }
  0xe1   :  { %v1022_v62 = vpack.c.bf16 %v425_v60, %v423_v58 }
  0xe2   :  { %v1024_v63 = vpop.f32.mrf.mxu0 }
  0xe4   :  { %v1026_v0 = vpop.f32.mrf.mxu0 }
  0xe6   :  { %v1028_v1 = vpop.f32.mrf.mxu0 }
  0xe8   :  { %v1030_v4 = vpop.f32.mrf.mxu0 }
  0xea   :  { %v1037_v8 = vpop.f32.mrf.mxu0 }
  0xec   :  { %v297_v11 = vpop.f32.mrf.mxu0 }
  0xed   :  { %v298_v12 = vadd.f32 %v297_v11, %v1002_v33 }
  0xee   :  { %v1046_v14 = vpop.f32.mrf.mxu0 }
  0xf0   :  { %v303_v15 = vpop.f32.mrf.mxu0 }
  0xf2   :  { %v305_v16 = vpop.f32.mrf.mxu0 }
  0xf4   :  { %v307_v17 = vpop.f32.mrf.mxu0 }
  0xf5   :  { %v308_v54 = vadd.f32 %v307_v17, %v1002_v33 }
  0xf6   :  { %v311_v18 = vpop.f32.mrf.mxu0 }
  0xf8   :  { %v313_v19 = vpop.f32.mrf.mxu0 }
  0xf9   :  { %v314_v50 = vadd.f32 %v313_v19, %v1002_v33  ;;  %v304_v19 = vadd.f32 %v303_v15, %v1002_v33 }
  0xfa   :  { %v315_v20 = vpop.f32.mrf.mxu0 }
  0xfb   :  { %v316_v55 = vadd.f32 %v315_v20, %v1000_v31  ;;  %v439_v20 = vmax.f32 %v314_v50, 0.0  ;;  %v292_v50 = vadd.f32 %v1028_v1, %v1000_v31 }
  0xfc   :  { %v317_v21 = vpop.f32.mrf.mxu0 }
  0xfd   :  { %v318_v41 = vadd.f32 %v317_v21, %v1002_v33  ;;  %v312_v21 = vadd.f32 %v311_v18, %v1000_v31 }
  0xfe   :  { %v321_v22 = vpop.f32.mrf.mxu0 }
  0xff   :  { %v322_v46 = vadd.f32 %v321_v22, %v1000_v31  ;;  %v441_v2 = vmax.f32 %v318_v41, 0.0  ;;  %v296_v41 = vadd.f32 %v1037_v8, %v1000_v31 }
 0x100   :  { %v323_v23 = vpop.f32.mrf.mxu0 }
 0x101   :  { %v324_v36 = vadd.f32 %v323_v23, %v1002_v33  ;;  %v442_v22 = vmax.f32 %v322_v46, 0.0  ;;  %v491_v11 = vpack.c.bf16 %v441_v2, %v439_v20 }
 0x102   :  { %v325_v24 = vpop.f32.mrf.mxu0 }
 0x103   :  { %v326_v38 = vadd.f32 %v325_v24, %v1000_v31  ;;  %v443_v51 = vmax.f32 %v324_v36, 0.0 }
 0x104   :  { %v327_v25 = vpop.f32.mrf.mxu0 }
 0x105   :  { %v328_v29 = vadd.f32 %v327_v25, %v1002_v33  ;;  %v444_v56 = vmax.f32 %v326_v38, 0.0  ;;  %v435_v38 = vmax.f32 %v304_v19, 0.0 }
 0x106   :  { %v331_v26 = vpop.f32.mrf.mxu0 }
 0x107   :  { %v332_v34 = vadd.f32 %v331_v26, %v1000_v31  ;;  %v445_v42 = vmax.f32 %v328_v29, 0.0  ;;  %v306_v26 = vadd.f32 %v305_v16, %v1000_v31  ;;  %v492_v29 = vpack.c.bf16 %v444_v56, %v442_v22 }
 0x108   :  { %v333_v27 = vpop.f32.mrf.mxu0 }
 0x109   :  { %v334_v30 = vadd.f32 %v333_v27, %v1002_v33  ;;  %v446_v47 = vmax.f32 %v332_v34, 0.0  ;;  %v493_v3 = vpack.c.bf16 %v445_v42, %v443_v51  ;;  %v437_v27 = vmax.f32 %v308_v54, 0.0 }
 0x10a   :  { %v335_v28 = vpop.f32.mrf.mxu0  ;;  %v302_v34 = vadd.f32 %v1046_v14, %v1000_v31  ;;  %v436_v42 = vmax.f32 %v306_v26, 0.0 }
 0x10b   :  { %v336_v32 = vadd.f32 %v335_v28, %v1000_v31  ;;  %v447_v43 = vmax.f32 %v334_v30, 0.0  ;;  %v440_v28 = vmax.f32 %v316_v55, 0.0  ;;  %v489_v46 = vpack.c.bf16 %v437_v27, %v435_v38 }
 0x10c   :  { %v337_v35 = vpop.f32.mrf.mxu0  ;;  %v434_v51 = vmax.f32 %v302_v34, 0.0  ;;  %v286_v55 = vadd.f32 %v1024_v63, %v1000_v31 }
 0x10d   :  { %v338_v37 = vadd.f32 %v337_v35, %v1002_v33  ;;  %v448_v39 = vmax.f32 %v336_v32, 0.0  ;;  %v438_v35 = vmax.f32 %v312_v21, 0.0 }
 0x10e   :  { %v341_v40 = vpop.f32.mrf.mxu0  ;;  %v428_v63 = vmax.f32 %v286_v55, 0.0 }
 0x10f   :  { %v449_v44 = vmax.f32 %v338_v37, 0.0  ;;  %v342_v52 = vadd.f32 %v341_v40, %v1000_v31  ;;  %v494_v60 = vpack.c.bf16 %v448_v39, %v446_v47  ;;  %v294_v37 = vadd.f32 %v1030_v4, %v1002_v33 }
 0x110   :  { %v343_v49 = vpop.f32.mrf.mxu0  ;;  %v288_v40 = vadd.f32 %v1026_v0, %v1002_v33  ;;  %v490_v14 = vpack.c.bf16 %v440_v28, %v438_v35 }
 0x111   :  { %v495_v53 = vpack.c.bf16 %v449_v44, %v447_v43  ;;  %v344_v6 = vadd.f32 %v343_v49, %v1002_v33  ;;  %v450_v23 = vmax.f32 %v342_v52, 0.0  ;;  %v433_v44 = vmax.f32 %v298_v12, 0.0 }
 0x112   :  { %v345_v58 = vpop.f32.mrf.mxu0  ;;  %v284_v49 = vadd.f32 %v1020_v61, %v1002_v33  ;;  %v431_v52 = vmax.f32 %v294_v37, 0.0  ;;  %v429_v56 = vmax.f32 %v288_v40, 0.0  ;;  %v430_v12 = vmax.f32 %v292_v50, 0.0 }
 0x113   :  { %v346_v9 = vadd.f32 %v345_v58, %v1000_v31  ;;  %548 = vmatprep.subr.bf16.mxu1 %v495_v53  ;;  %v451_v32 = vmax.f32 %v344_v6, 0.0  ;;  %v432_v58 = vmax.f32 %v296_v41, 0.0 }
 0x114   :  { %v347_v17 = vpop.f32.mrf.mxu0  ;;  %549 = vmatpush1.bf16.msra.mxu1 %v494_v60  ;;  %v488_v60 = vpack.c.bf16 %v436_v42, %v434_v51  ;;  %v487_v61 = vpack.c.bf16 %v433_v44, %v431_v52  ;;  %v427_v21 = vmax.f32 %v284_v49, 0.0 }
 0x115   :  { %v452_v24 = vmax.f32 %v346_v9, 0.0  ;;  %v348_v25 = vadd.f32 %v347_v17, %v1002_v33  ;;  %550 = vmatprep.subr.bf16.mxu1 %v493_v3  ;;  %v282_v9 = vadd.f32 %v1016_v57, %v1000_v31  ;;  %v486_v17 = vpack.c.bf16 %v432_v58, %v430_v12 }
 0x116   :  { %v351_v30 = vpop.f32.mrf.mxu0 }
 0x117   :  { %v1068_v15 = vpack.c.bf16 %v452_v24, %v450_v23  ;;  %v453_v18 = vmax.f32 %v348_v25, 0.0  ;;  %v352_v39 = vadd.f32 %v351_v30, %v1000_v31  ;;  %v485_v23 = vpack.c.bf16 %v429_v56, %v427_v21 }
 0x118   :  { %v353_v36 = vpop.f32.mrf.mxu0  ;;  %551 = vmatpush1.bf16.msra.mxu1 %v492_v29  ;;  %v426_v24 = vmax.f32 %v282_v9, 0.0 }
 0x119   :  { %v1074_v16 = vpack.c.bf16 %v453_v18, %v451_v32  ;;  %552 = vmatprep.subr.bf16.mxu1 %v491_v11  ;;  %v354_v47 = vadd.f32 %v353_v36, %v1002_v33  ;;  %v454_v8 = vmax.f32 %v352_v39, 0.0 }
 0x11a   :  { %v355_v43 = vpop.f32.mrf.mxu0  ;;  %v484_v26 = vpack.c.bf16 %v428_v63, %v426_v24 }
 0x11b   :  { %v356_v4 = vadd.f32 %v355_v43, %v1000_v31  ;;  %v455_v3 = vmax.f32 %v354_v47, 0.0 }
 0x11c   :  { %v357_v0 = vpop.f32.mrf.mxu0  ;;  %553 = vmatpush1.bf16.msra.mxu1 %v490_v14 }
 0x11d   :  { %v456_v53 = vmax.f32 %v356_v4, 0.0  ;;  %v358_v54 = vadd.f32 %v357_v0, %v1002_v33  ;;  %554 = vmatprep.subr.bf16.mxu1 %v489_v46 }
 0x11e   :  { %v1090_v2 = vpop.f32.mrf.mxu0 }
 0x11f   :  { %v1092_v1 = vpack.c.bf16 %v456_v53, %v454_v8  ;;  %v457_v6 = vmax.f32 %v358_v54, 0.0 }
 0x120   :  { %v1096_v19 = vpop.f32.mrf.mxu0  ;;  %555 = vmatpush1.bf16.msra.mxu1 %v488_v60 }
 0x121   :  { %v1098_v22 = vpack.c.bf16 %v457_v6, %v455_v3  ;;  %556 = vmatprep.subr.bf16.mxu1 %v487_v61 }
 0x122   :  { %v1100_v20 = vpop.f32.mrf.mxu0 }
 0x124   :  { %v1102_v25 = vpop.f32.mrf.mxu0  ;;  %557 = vmatpush1.bf16.msra.mxu1 %v486_v17 }
 0x125   :  { %558 = vmatprep.subr.bf16.mxu1 %v485_v23 }
 0x126   :  { %v1104_v57 = vpop.f32.mrf.mxu0 }
 0x128   :  { %v373_v27 = vpop.f32.mrf.mxu0  ;;  %559 = vmatpush1.bf16.msra.mxu1 %v484_v26 }
 0x129   :  { %560 = vmatprep.subr.bf16.mxu1 %v1022_v62 }
 0x12a   :  { %v375_v28 = vpop.f32.mrf.mxu0 }
 0x12c   :  { %v377_v29 = vpop.f32.mrf.mxu0  ;;  %561 = vmatpush1.bf16.msra.mxu1 %v1018_v59 }
 0x12d   :  { %562 = vmatprep.subr.bf16.mxu1 %v1010_v48  ;;  %v378_v23 = vadd.f32 %v377_v29, %v1002_v33  ;;  %v372_v29 = vadd.f32 %v1104_v57, %v1000_v31 }
 0x12e   :  { %v381_v30 = vpop.f32.mrf.mxu0 }
 0x130   :  { %v383_v11 = vpop.f32.mrf.mxu0  ;;  %563 = vmatpush1.bf16.msra.mxu1 %v1008_v45 }
 0x131   :  { %v384_v9 = vadd.f32 %v383_v11, %v1002_v33  ;;  %v376_v11 = vadd.f32 %v375_v28, %v1000_v31  ;;  %v366_v28 = vadd.f32 %v1100_v20, %v1000_v31  ;;  %v841_v20 = vld [vmem:[%s1202_s4 + $0x50] sm:$0xff]  }
 0x132   :  { %v385_v32 = vpop.f32.mrf.mxu0 }
 0x133   :  { %v386_v21 = vadd.f32 %v385_v32, %v1000_v31  ;;  %v368_v32 = vadd.f32 %v1102_v25, %v1002_v33  ;;  %v362_v25 = vadd.f32 %v1090_v2, %v1000_v31  ;;  %v833_v2 = vld [vmem:[%s1202_s4 + $0x30] sm:$0xff]  }
 0x134   :  { %v387_v18 = vpop.f32.mrf.mxu0 }
 0x135   :  { %v388_v56 = vadd.f32 %v387_v18, %v1002_v33  ;;  %v382_v18 = vadd.f32 %v381_v30, %v1000_v31  ;;  %v364_v30 = vadd.f32 %v1096_v19, %v1002_v33 }
 0x136   :  { %v391_v34 = vpop.f32.mrf.mxu0 }
 0x137   :  { %v392_v3 = vadd.f32 %v391_v34, %v1000_v31  ;;  %v469_v24 = vmax.f32 %v388_v56, 0.0  ;;  %v374_v34 = vadd.f32 %v373_v27, %v1002_v33  ;;  %v459_v57 = vmax.f32 %v364_v30, 0.0 }
 0x138   :  { %v393_v35 = vpop.f32.mrf.mxu0 }
 0x139   :  { %v394_v52 = vadd.f32 %v393_v35, %v1002_v33  ;;  %v470_v35 = vmax.f32 %v392_v3, 0.0  ;;  %v463_v27 = vmax.f32 %v374_v34, 0.0 }
 0x13a   :  { %v395_v36 = vpop.f32.mrf.mxu0 }
 0x13b   :  { %v396_v54 = vadd.f32 %v395_v36, %v1000_v31  ;;  %v471_v12 = vmax.f32 %v394_v52, 0.0  ;;  %v467_v36 = vmax.f32 %v384_v9, 0.0 }
 0x13c   :  { %v397_v37 = vpop.f32.mrf.mxu0 }
 0x13d   :  { %v398_v47 = vadd.f32 %v397_v37, %v1002_v33  ;;  %v472_v63 = vmax.f32 %v396_v54, 0.0  ;;  %v468_v37 = vmax.f32 %v386_v21, 0.0 }
 0x13e   :  { %v401_v38 = vpop.f32.mrf.mxu0 }
 0x13f   :  { %v402_v51 = vadd.f32 %v401_v38, %v1000_v31  ;;  %v473_v58 = vmax.f32 %v398_v47, 0.0  ;;  %v506_v38 = vpack.c.bf16 %v472_v63, %v470_v35  ;;  %v843_v47 = vld [vmem:[%s1202_s4 + $0x40] sm:$0xff]  }
 0x140   :  { %v403_v39 = vpop.f32.mrf.mxu0 }
 0x141   :  { %v404_v14 = vadd.f32 %v403_v39, %v1002_v33  ;;  %v474_v6 = vmax.f32 %v402_v51, 0.0  ;;  %v507_v26 = vpack.c.bf16 %v473_v58, %v471_v12  ;;  %v465_v39 = vmax.f32 %v378_v23, 0.0 }
 0x142   :  { %v405_v40 = vpop.f32.mrf.mxu0 }
 0x143   :  { %v406_v44 = vadd.f32 %v405_v40, %v1000_v31  ;;  %v475_v8 = vmax.f32 %v404_v14, 0.0  ;;  %v505_v40 = vpack.c.bf16 %v469_v24, %v467_v36  ;;  %v462_v14 = vmax.f32 %v372_v29, 0.0 }
 0x144   :  { %v407_v62 = vpop.f32.mrf.mxu0 }
 0x145   :  { %v408_v42 = vadd.f32 %v407_v62, %v1002_v33  ;;  %v476_v55 = vmax.f32 %v406_v44, 0.0  ;;  %v466_v62 = vmax.f32 %v382_v18, 0.0 }
 0x146   :  { %v411_v41 = vpop.f32.mrf.mxu0 }
 0x147   :  { %v412_v59 = vadd.f32 %v411_v41, %v1000_v31  ;;  %v477_v4 = vmax.f32 %v408_v42, 0.0  ;;  %v508_v17 = vpack.c.bf16 %v476_v55, %v474_v6  ;;  %v464_v41 = vmax.f32 %v376_v11, 0.0  ;;  %v832_v31 = vld [vmem:[%s1202_s4 + $0x38] sm:$0xff]  }
 0x148   :  { %v413_v48 = vpop.f32.mrf.mxu0  ;;  %v504_v42 = vpack.c.bf16 %v468_v37, %v466_v62 }
 0x149   :  { %v478_v43 = vmax.f32 %v412_v59, 0.0  ;;  %v414_v45 = vadd.f32 %v413_v48, %v1002_v33  ;;  %v509_v60 = vpack.c.bf16 %v477_v4, %v475_v8  ;;  %v461_v59 = vmax.f32 %v368_v32, 0.0  ;;  %v792_v8 = vld [vmem:[%s1203_s5] ss:$0 sm:$0xff] }
 0x14a   :  { %v415_v46 = vpop.f32.mrf.mxu0  ;;  %v503_v48 = vpack.c.bf16 %v465_v39, %v463_v27  ;;  %v458_v33 = vmax.f32 %v362_v25, 0.0 }
 0x14b   :  { %v510_v49 = vpack.c.bf16 %v478_v43, %v478_v43  ;;  %v479_v50 = vmax.f32 %v414_v45, 0.0  ;;  %v460_v43 = vmax.f32 %v366_v28, 0.0  ;;  %v502_v45 = vpack.c.bf16 %v464_v41, %v462_v14  ;;  %v842_v46 = vld [vmem:[%s1202_s4 + $0x48] sm:$0xff]  }
 0x14c   :  { %v416_v0 = vpop.f32.mrf.mxu0  ;;  %v501_v44 = vpack.c.bf16 %v461_v59, %v459_v57 }
 0x14d   :  { %v511_v53 = vpack.c.bf16 %v479_v50, %v479_v50  ;;  %v543_v61 = vsel %vm541_vm4, %v510_v49, 0  ;;  %v500_v19 = vpack.c.bf16 %v460_v43, %v458_v33 }
 0x14f   :  { %790 = vmatprep.subr.msk.bf16.mxu1 %vm541_vm4, %v511_v53 }
 0x150   :  { %565 = vmatpush2.bf16.msra.mxu1 %v543_v61 }
 0x151   :  { %566 = vmatprep.subr.bf16.mxu1 %v509_v60 }
 0x154   :  { %567 = vmatpush2.bf16.msra.mxu1 %v508_v17 }
 0x155   :  { %568 = vmatprep.subr.bf16.mxu1 %v507_v26 }
 0x158   :  { %569 = vmatpush2.bf16.msra.mxu1 %v506_v38 }
 0x159   :  { %570 = vmatprep.subr.bf16.mxu1 %v505_v40 }
 0x15c   :  { %571 = vmatpush2.bf16.msra.mxu1 %v504_v42 }
 0x15d   :  { %572 = vmatprep.subr.bf16.mxu1 %v503_v48 }
 0x160   :  { %573 = vmatpush2.bf16.msra.mxu1 %v502_v45 }
 0x161   :  { %574 = vmatprep.subr.bf16.mxu1 %v501_v44 }
 0x164   :  { %575 = vmatpush2.bf16.msra.mxu1 %v500_v19 }
 0x165   :  { %576 = vmatprep.subr.bf16.mxu1 %v1098_v22  ;;  %v840_v22 = vld [vmem:[%s1202_s4 + $0x58] sm:$0xff]  }
 0x168   :  { %577 = vmatpush2.bf16.msra.mxu1 %v1092_v1  ;;  %v839_v1 = vld [vmem:[%s1202_s4] sm:$0xff]  }
 0x169   :  { %578 = vmatprep.subr.bf16.mxu1 %v1074_v16  ;;  %v838_v16 = vld [vmem:[%s1202_s4 + $0x8] sm:$0xff]  }
 0x16c   :  { %579 = vmatpush2.bf16.msra.mxu1 %v1068_v15  ;;  %v834_v15 = vld [vmem:[%s1202_s4 + $0x28] sm:$0xff]  }
 0x16d   :  { %698 = vmatprep.subr.bf16.mxu1 %v867_v5 }
 0x16f   :  { %581 = vmatmul.mubr.bf16.vlgmr.msra.gmra.mxu1 %v528_v13  ;;  %v837_v13 = vld [vmem:[%s1202_s4 + $0x10] sm:$0xff]   ;;  %s844_s4 = scalar_lea.vmem %s746_s2, 32 }
 0x170   :  { %699 = vmatpush1.bf16.msra.mxu1 %v832_v31  ;;  %p845_p0 = scmp.ne.s32.totalorder %s746_s2, %s844_s4  ;;  %p850_p2 = scmp.lt.s32.totalorder %s844_s4, %s844_s4 }
 0x171   :  { %700 = vmatprep.subr.bf16.mxu1 %v867_v5 }
 0x172   :  { %p851_p3 = por %p850_p2, %p849_p1 }
 0x174   :  { %701 = vmatpush1.bf16.msra.mxu1 %v833_v2  ;;  %p852_p4 = pnand %p851_p3, %p845_p0 }
 0x175   :  { %702 = vmatprep.subr.bf16.mxu1 %v867_v5 }
 0x178   :  { %703 = vmatpush1.bf16.msra.mxu1 %v834_v15 }
 0x179   :  { %704 = vmatprep.subr.bf16.mxu1 %v867_v5 }
 0x17c   :  { %705 = vmatpush1.bf16.msra.mxu1 %v835_v7 }
 0x17d   :  { %706 = vmatprep.subr.bf16.mxu1 %v867_v5 }
 0x180   :  { %707 = vmatpush1.bf16.msra.mxu1 %v836_v10 }
 0x181   :  { %708 = vmatprep.subr.bf16.mxu1 %v867_v5 }
 0x184   :  { %709 = vmatpush1.bf16.msra.mxu1 %v837_v13 }
 0x185   :  { %710 = vmatprep.subr.bf16.mxu1 %v867_v5 }
 0x188   :  { %711 = vmatpush1.bf16.msra.mxu1 %v838_v16 }
 0x189   :  { %712 = vmatprep.subr.bf16.mxu1 %v867_v5 }
 0x18c   :  { %713 = vmatpush1.bf16.msra.mxu1 %v839_v1 }
 0x18d   :  { %722 = vmatprep.subr.bf16.mxu1 %v867_v5 }
 0x190   :  { %723 = vmatpush2.bf16.msra.mxu1 %v840_v22 }
 0x191   :  { %724 = vmatprep.subr.bf16.mxu1 %v867_v5 }
 0x194   :  { %725 = vmatpush2.bf16.msra.mxu1 %v841_v20 }
 0x195   :  { %726 = vmatprep.subr.bf16.mxu1 %v867_v5 }
 0x198   :  { %727 = vmatpush2.bf16.msra.mxu1 %v842_v46 }
 0x199   :  { %728 = vmatprep.subr.bf16.mxu1 %v867_v5 }
 0x19c   :  { %729 = vmatpush2.bf16.msra.mxu1 %v843_v47 }
 0x22f   :  { %v582_v4 = vpop.f32.mrf.mxu1 }
 0x230   :  { %v589_v51 = vpack.c.bf16 %v582_v4, %v582_v4 }
 0x231   :  { %v584_v49 = vpop.f32.mrf.mxu1 }
 0x232   :  { %v590_v50 = vpack.c.bf16 %v584_v49, %v584_v49 }
 0x233   :  { %v586_v0 = vpop.f32.mrf.mxu1 }
 0x234   :  { %805 = vmatprep.mubr.msk.bf16.mxu1 %vm694_vm5, %v590_v50 }
 0x235   :  { %v587_v52 = vpop.f32.mrf.mxu1  ;;  %731 = vmatmul.mubr.bf16.vlgmr.msra.gmra.mxu1 %v589_v51 }
 0x2f5   :  { %v732_v5 = vpop.f32.mrf.mxu1 }
 0x2f6   :  { %v733_v53 = vadd.f32 %v792_v8, %v732_v5 }
 0x2f7   :  { %v734_v54 = vpop.f32.mrf.mxu1 }
 0x2f8   :  { %738 = vst [vmem:[#allocation2] sm:$0x3] %v733_v53 }
 0x2f9   :  { %v735_v55 = vpop.f32.mrf.mxu1 }
 0x2fa   :  { %855 = shalt.err (!%p852_p4)
}
 0x2fb   :  { %748 = dma.vmem_to_hbm [thread:$0]  %s746_s2, 32, %s1204_s6, [#allocation3]   ;;  %v736_v56 = vpop.f32.mrf.mxu1 }
 0x2fc   :  { %864 = dma.done.wait [#allocation3], 32  }
 0x2fd   :  { %865 = vsyncadd [#allocation3], 4294967264 }
 0x2fe   :  { %752 = vsyncpa [#allocation3], 1 }

</bundles_post_ra>
